<compile_context>
chip_gen: v7x
topology: tpu7x:2x2x1
jax: 0.10.0
libtpu: 0.0.40
codegen_flags: <defaults>
</compile_context>

<pallas_src>
import jax
import jax.numpy as jnp
from jax import lax
from jax.experimental import pallas as pl
from jax.experimental.pallas import tpu as pltpu


def _fingerprint_attn_kernel(x_ref, wf_ref, bf_ref, wa_ref, attn_out_ref, pool_ref):
    x = x_ref[...]                      # (TB, L)
    TB, L = x.shape
    wf = wf_ref[...]                    # (3, C, 1)  -- channel on sublanes
    wa = wa_ref[...]                    # (3, C, 1)
    bf = bf_ref[...]                    # (1, C, 1)

    # Conv1d padding=1 neighbours via lane rotation + edge mask (no (B, L+2) temp).
    lane = lax.broadcasted_iota(jnp.int32, (TB, L), 1)
    xm1 = jnp.where(lane == 0, 0.0, pltpu.roll(x, shift=1, axis=1))        # x[:, l-1]
    xp1 = jnp.where(lane == L - 1, 0.0, pltpu.roll(x, shift=L - 1, axis=1))  # x[:, l+1]

    xm1e = xm1[:, None, :]              # (TB, 1, L)
    x0e = x[:, None, :]
    xp1e = xp1[:, None, :]

    # Feature conv keeps its bias; attention conv drops it (constant along the
    # softmax axis, cancels exactly).
    feat = wf[0] * xm1e + wf[1] * x0e + wf[2] * xp1e + bf                  # (TB, C, L)
    attn = wa[0] * xm1e + wa[1] * x0e + wa[2] * xp1e                       # (TB, C, L)

    # Stable softmax folded into the weighted-sum reduction: never build attn_w.
    amax = jnp.max(attn, axis=-1, keepdims=True)
    e = jnp.exp(attn - amax)                                               # (TB, C, L)
    denom = jnp.sum(e, axis=-1)                                            # (TB, C)
    num = jnp.sum(feat * e, axis=-1)                                       # (TB, C)

    attn_out_ref[...] = num * pl.reciprocal(denom, approx=True)            # (TB, C)
    pool_ref[...] = jnp.max(feat, axis=-1)                                 # (TB, C)


def fingerprint_attention_cnn(x, w_feat, b_feat, w_attn, b_attn):
    """x: (B, L) f32; w_*: (C, 1, 3) f32 (PyTorch Conv1d layout); b_*: (C,) f32."""
    B, L = x.shape
    C = w_feat.shape[0]

    # Wrapper-side re-layout: (C, 1, 3) -> (3, C, 1) so channels sit on sublanes
    # inside the kernel; feature bias -> (1, C, 1). Attention bias is not needed.
    wf = jnp.transpose(w_feat, (2, 0, 1)).astype(jnp.float32)   # (3, C, 1)
    wa = jnp.transpose(w_attn, (2, 0, 1)).astype(jnp.float32)   # (3, C, 1)
    bf = b_feat.reshape(1, C, 1).astype(jnp.float32)            # (1, C, 1)

    # Batch tile: full batch when small; 64-row (multiple-of-8) tiles when it grows,
    # pipelined over a parallel grid axis (shards across v7x's two TensorCores).
    TB = B if B <= 64 else 64
    grid = (pl.cdiv(B, TB),)

    attn_out, pooled = pl.pallas_call(
        _fingerprint_attn_kernel,
        out_shape=(jax.ShapeDtypeStruct((B, C), jnp.float32),
                   jax.ShapeDtypeStruct((B, C), jnp.float32)),
        grid=grid,
        in_specs=[
            pl.BlockSpec((TB, L), lambda i: (i, 0)),
            pl.BlockSpec((3, C, 1), lambda i: (0, 0, 0)),
            pl.BlockSpec((1, C, 1), lambda i: (0, 0, 0)),
            pl.BlockSpec((3, C, 1), lambda i: (0, 0, 0)),
        ],
        out_specs=(
            pl.BlockSpec((TB, C), lambda i: (i, 0)),
            pl.BlockSpec((TB, C), lambda i: (i, 0)),
        ),
        compiler_params=pltpu.CompilerParams(
            dimension_semantics=("parallel",)),
    )(x.astype(jnp.float32), wf, bf, wa)

    # Concat in the wrapper (avoids a narrow-lane in-kernel concat/store).
    return jnp.concatenate([attn_out, pooled], axis=1)          # (B, 2C)


def _reference(x, w_feat, b_feat, w_attn, b_attn):
    # Pure-JAX reference mirroring the PyTorch forward.
    B, L = x.shape
    x_pad = jnp.pad(x, ((0, 0), (1, 1)))
    taps = jnp.stack([x_pad[:, :L], x, x_pad[:, 2:]], axis=-1)        # (B, L, 3)
    feat = jnp.einsum('blk,ck->bcl', taps, w_feat[:, 0, :]) + b_feat[None, :, None]
    attn = jnp.einsum('blk,ck->bcl', taps, w_attn[:, 0, :]) + b_attn[None, :, None]
    aw = jax.nn.softmax(attn, axis=-1)
    attn_out = jnp.sum(feat * aw, axis=-1)
    pooled = jnp.max(feat, axis=-1)
    return jnp.concatenate([attn_out, pooled], axis=1)


if __name__ == "__main__":
    B, L, C = 2, 128, 8   # batch, input_dim (fingerprint length), conv_channels

    key = jax.random.PRNGKey(0)
    kx, kwf, kbf, kwa, kba = jax.random.split(key, 5)

    x = jax.random.normal(kx, (B, L), dtype=jnp.float32)
    # Deterministic synthetic Conv1d params (PyTorch layout: (out_ch, in_ch=1, k=3)).
    bound = 1.0 / (1 * 3) ** 0.5
    w_feat = jax.random.uniform(kwf, (C, 1, 3), jnp.float32, -bound, bound)
    b_feat = jax.random.uniform(kbf, (C,), jnp.float32, -bound, bound)
    w_attn = jax.random.uniform(kwa, (C, 1, 3), jnp.float32, -bound, bound)
    b_attn = jax.random.uniform(kba, (C,), jnp.float32, -bound, bound)

    out = fingerprint_attention_cnn(x, w_feat, b_feat, w_attn, b_attn)
    out = jax.block_until_ready(out)

    ref = _reference(x, w_feat, b_feat, w_attn, b_attn)
    assert out.shape == (B, 2 * C)
    # Max-pool half is exact math -> tight tolerance.
    assert jnp.allclose(out[:, C:], ref[:, C:], atol=1e-5, rtol=1e-5), "pooled mismatch"
    # Attention half uses the EUP approximate reciprocal -> small relative-error budget.
    assert jnp.allclose(out[:, :C], ref[:, :C], atol=2e-3, rtol=2e-3), "attn_out mismatch"

    print("KERNEL_OK")
</pallas_src>

<mosaic_0001>
module attributes {stable_mosaic.version = 11 : i64} {
  func.func @_fingerprint_attn_kernel(%arg0: i32, %arg1: memref<2x128xf32, #tpu.memory_space<vmem>>, %arg2: memref<3x8x1xf32, #tpu.memory_space<vmem>>, %arg3: memref<1x8x1xf32, #tpu.memory_space<vmem>>, %arg4: memref<3x8x1xf32, #tpu.memory_space<vmem>>, %arg5: memref<2x8xf32, #tpu.memory_space<vmem>>, %arg6: memref<2x8xf32, #tpu.memory_space<vmem>>) attributes {dimension_semantics = [#tpu.dimension_semantics<parallel>], iteration_bounds = array<i64: 1>, scalar_prefetch = 0 : i64, scratch_operands = 0 : i64, tpu.core_type = #tpu.core_type<tc>, window_params = [{transform_indices = @transform_0, window_bounds = array<i64: 2, 128>}, {pipeline_mode = #tpu.pipeline_mode<synchronous>, transform_indices = @transform_1, window_bounds = array<i64: 3, 8, 1>}, {pipeline_mode = #tpu.pipeline_mode<synchronous>, transform_indices = @transform_2, window_bounds = array<i64: 1, 8, 1>}, {pipeline_mode = #tpu.pipeline_mode<synchronous>, transform_indices = @transform_3, window_bounds = array<i64: 3, 8, 1>}, {transform_indices = @transform_4, window_bounds = array<i64: 2, 8>}, {transform_indices = @transform_5, window_bounds = array<i64: 2, 8>}]} {
    %c0 = arith.constant 0 : index
    %c0_0 = arith.constant 0 : index
    %0 = vector.load %arg1[%c0, %c0_0] : memref<2x128xf32, #tpu.memory_space<vmem>>, vector<2x128xf32>
    %c0_1 = arith.constant 0 : index
    %c0_2 = arith.constant 0 : index
    %c0_3 = arith.constant 0 : index
    %1 = vector.load %arg2[%c0_1, %c0_2, %c0_3] : memref<3x8x1xf32, #tpu.memory_space<vmem>>, vector<3x8x1xf32>
    %c0_4 = arith.constant 0 : index
    %c0_5 = arith.constant 0 : index
    %c0_6 = arith.constant 0 : index
    %2 = vector.load %arg4[%c0_4, %c0_5, %c0_6] : memref<3x8x1xf32, #tpu.memory_space<vmem>>, vector<3x8x1xf32>
    %c0_7 = arith.constant 0 : index
    %c0_8 = arith.constant 0 : index
    %c0_9 = arith.constant 0 : index
    %3 = vector.load %arg3[%c0_7, %c0_8, %c0_9] : memref<1x8x1xf32, #tpu.memory_space<vmem>>, vector<1x8x1xf32>
    %4 = tpu.iota {dimensions = array<i32: 1>} : vector<2x128xi32>
    %c0_i32 = arith.constant 0 : i32
    %5 = vector.broadcast %c0_i32 : i32 to vector<2x128xi32>
    %6 = arith.cmpi eq, %4, %5 : vector<2x128xi32>
    %c1_i32 = arith.constant 1 : i32
    %7 = tpu.dynamic_rotate %0 by %c1_i32 dim 1 : vector<2x128xf32>, i32 -> vector<2x128xf32>
    %cst = arith.constant 0.000000e+00 : f32
    %8 = vector.broadcast %cst : f32 to vector<2x128xf32>
    %9 = arith.select %6, %8, %7 : vector<2x128xi1>, vector<2x128xf32>
    %c127_i32 = arith.constant 127 : i32
    %10 = vector.broadcast %c127_i32 : i32 to vector<2x128xi32>
    %11 = arith.cmpi eq, %4, %10 : vector<2x128xi32>
    %c127_i32_10 = arith.constant 127 : i32
    %12 = tpu.dynamic_rotate %0 by %c127_i32_10 dim 1 : vector<2x128xf32>, i32 -> vector<2x128xf32>
    %cst_11 = arith.constant 0.000000e+00 : f32
    %13 = vector.broadcast %cst_11 : f32 to vector<2x128xf32>
    %14 = arith.select %11, %13, %12 : vector<2x128xi1>, vector<2x128xf32>
    %15 = vector.shape_cast %9 : vector<2x128xf32> to vector<2x1x128xf32>
    %16 = vector.shape_cast %0 : vector<2x128xf32> to vector<2x1x128xf32>
    %17 = vector.shape_cast %14 : vector<2x128xf32> to vector<2x1x128xf32>
    %18 = vector.extract_strided_slice %1 {offsets = [0, 0, 0], sizes = [1, 8, 1], strides = [1, 1, 1]} : vector<3x8x1xf32> to vector<1x8x1xf32>
    %19 = vector.shape_cast %18 : vector<1x8x1xf32> to vector<8x1xf32>
    %20 = vector.shape_cast %19 : vector<8x1xf32> to vector<1x8x1xf32>
    %21 = vector.broadcast %20 : vector<1x8x1xf32> to vector<2x8x128xf32>
    %22 = vector.broadcast %15 : vector<2x1x128xf32> to vector<2x8x128xf32>
    %23 = arith.mulf %21, %22 : vector<2x8x128xf32>
    %24 = vector.extract_strided_slice %1 {offsets = [1, 0, 0], sizes = [1, 8, 1], strides = [1, 1, 1]} : vector<3x8x1xf32> to vector<1x8x1xf32>
    %25 = vector.shape_cast %24 : vector<1x8x1xf32> to vector<8x1xf32>
    %26 = vector.shape_cast %25 : vector<8x1xf32> to vector<1x8x1xf32>
    %27 = vector.broadcast %26 : vector<1x8x1xf32> to vector<2x8x128xf32>
    %28 = vector.broadcast %16 : vector<2x1x128xf32> to vector<2x8x128xf32>
    %29 = arith.mulf %27, %28 : vector<2x8x128xf32>
    %30 = arith.addf %23, %29 : vector<2x8x128xf32>
    %31 = vector.extract_strided_slice %1 {offsets = [2, 0, 0], sizes = [1, 8, 1], strides = [1, 1, 1]} : vector<3x8x1xf32> to vector<1x8x1xf32>
    %32 = vector.shape_cast %31 : vector<1x8x1xf32> to vector<8x1xf32>
    %33 = vector.shape_cast %32 : vector<8x1xf32> to vector<1x8x1xf32>
    %34 = vector.broadcast %33 : vector<1x8x1xf32> to vector<2x8x128xf32>
    %35 = vector.broadcast %17 : vector<2x1x128xf32> to vector<2x8x128xf32>
    %36 = arith.mulf %34, %35 : vector<2x8x128xf32>
    %37 = arith.addf %30, %36 : vector<2x8x128xf32>
    %38 = vector.broadcast %3 : vector<1x8x1xf32> to vector<2x8x128xf32>
    %39 = arith.addf %37, %38 : vector<2x8x128xf32>
    %40 = vector.extract_strided_slice %2 {offsets = [0, 0, 0], sizes = [1, 8, 1], strides = [1, 1, 1]} : vector<3x8x1xf32> to vector<1x8x1xf32>
    %41 = vector.shape_cast %40 : vector<1x8x1xf32> to vector<8x1xf32>
    %42 = vector.shape_cast %41 : vector<8x1xf32> to vector<1x8x1xf32>
    %43 = vector.broadcast %42 : vector<1x8x1xf32> to vector<2x8x128xf32>
    %44 = vector.broadcast %15 : vector<2x1x128xf32> to vector<2x8x128xf32>
    %45 = arith.mulf %43, %44 : vector<2x8x128xf32>
    %46 = vector.extract_strided_slice %2 {offsets = [1, 0, 0], sizes = [1, 8, 1], strides = [1, 1, 1]} : vector<3x8x1xf32> to vector<1x8x1xf32>
    %47 = vector.shape_cast %46 : vector<1x8x1xf32> to vector<8x1xf32>
    %48 = vector.shape_cast %47 : vector<8x1xf32> to vector<1x8x1xf32>
    %49 = vector.broadcast %48 : vector<1x8x1xf32> to vector<2x8x128xf32>
    %50 = vector.broadcast %16 : vector<2x1x128xf32> to vector<2x8x128xf32>
    %51 = arith.mulf %49, %50 : vector<2x8x128xf32>
    %52 = arith.addf %45, %51 : vector<2x8x128xf32>
    %53 = vector.extract_strided_slice %2 {offsets = [2, 0, 0], sizes = [1, 8, 1], strides = [1, 1, 1]} : vector<3x8x1xf32> to vector<1x8x1xf32>
    %54 = vector.shape_cast %53 : vector<1x8x1xf32> to vector<8x1xf32>
    %55 = vector.shape_cast %54 : vector<8x1xf32> to vector<1x8x1xf32>
    %56 = vector.broadcast %55 : vector<1x8x1xf32> to vector<2x8x128xf32>
    %57 = vector.broadcast %17 : vector<2x1x128xf32> to vector<2x8x128xf32>
    %58 = arith.mulf %56, %57 : vector<2x8x128xf32>
    %59 = arith.addf %52, %58 : vector<2x8x128xf32>
    %cst_12 = arith.constant dense<0xFF800000> : vector<2x8xf32>
    %60 = vector.multi_reduction <maximumf>, %59, %cst_12 [2] : vector<2x8x128xf32> to vector<2x8xf32>
    %61 = vector.shape_cast %60 : vector<2x8xf32> to vector<2x8x1xf32>
    %62 = vector.broadcast %61 : vector<2x8x1xf32> to vector<2x8x128xf32>
    %63 = arith.subf %59, %62 : vector<2x8x128xf32>
    %64 = math.exp %63 : vector<2x8x128xf32>
    %cst_13 = arith.constant dense<0.000000e+00> : vector<2x8xf32>
    %65 = vector.multi_reduction <add>, %64, %cst_13 [2] : vector<2x8x128xf32> to vector<2x8xf32>
    %66 = arith.mulf %39, %64 : vector<2x8x128xf32>
    %cst_14 = arith.constant dense<0.000000e+00> : vector<2x8xf32>
    %67 = vector.multi_reduction <add>, %66, %cst_14 [2] : vector<2x8x128xf32> to vector<2x8xf32>
    %68 = tpu.reciprocal %65 {approx = true} : vector<2x8xf32> -> vector<2x8xf32>
    %69 = arith.mulf %67, %68 : vector<2x8xf32>
    %c0_15 = arith.constant 0 : index
    %c0_16 = arith.constant 0 : index
    %70 = vector.load %arg5[%c0_15, %c0_16] : memref<2x8xf32, #tpu.memory_space<vmem>>, vector<2x8xf32>
    tpu.vector_store %arg5[%c0_15, %c0_16], %69 {strides = array<i32>} : memref<2x8xf32, #tpu.memory_space<vmem>>, vector<2x8xf32>,
    %cst_17 = arith.constant dense<0xFF800000> : vector<2x8xf32>
    %71 = vector.multi_reduction <maximumf>, %39, %cst_17 [2] : vector<2x8x128xf32> to vector<2x8xf32>
    %c0_18 = arith.constant 0 : index
    %c0_19 = arith.constant 0 : index
    %72 = vector.load %arg6[%c0_18, %c0_19] : memref<2x8xf32, #tpu.memory_space<vmem>>, vector<2x8xf32>
    tpu.vector_store %arg6[%c0_18, %c0_19], %71 {strides = array<i32>} : memref<2x8xf32, #tpu.memory_space<vmem>>, vector<2x8xf32>,
    return
  }
  func.func @transform_0(%arg0: i32) -> (i32, i32) {
    %c0_i32 = arith.constant 0 : i32
    %c0_i32_0 = arith.constant 0 : i32
    return %arg0, %c0_i32 : i32, i32
  }
  func.func @transform_1(%arg0: i32) -> (i32, i32, i32) {
    %c0_i32 = arith.constant 0 : i32
    %c0_i32_0 = arith.constant 0 : i32
    %c0_i32_1 = arith.constant 0 : i32
    %c0_i32_2 = arith.constant 0 : i32
    return %c0_i32, %c0_i32_0, %c0_i32_1 : i32, i32, i32
  }
  func.func @transform_2(%arg0: i32) -> (i32, i32, i32) {
    %c0_i32 = arith.constant 0 : i32
    %c0_i32_0 = arith.constant 0 : i32
    %c0_i32_1 = arith.constant 0 : i32
    %c0_i32_2 = arith.constant 0 : i32
    return %c0_i32, %c0_i32_0, %c0_i32_1 : i32, i32, i32
  }
  func.func @transform_3(%arg0: i32) -> (i32, i32, i32) {
    %c0_i32 = arith.constant 0 : i32
    %c0_i32_0 = arith.constant 0 : i32
    %c0_i32_1 = arith.constant 0 : i32
    %c0_i32_2 = arith.constant 0 : i32
    return %c0_i32, %c0_i32_0, %c0_i32_1 : i32, i32, i32
  }
  func.func @transform_4(%arg0: i32) -> (i32, i32) {
    %c0_i32 = arith.constant 0 : i32
    %c0_i32_0 = arith.constant 0 : i32
    return %arg0, %c0_i32 : i32, i32
  }
  func.func @transform_5(%arg0: i32) -> (i32, i32) {
    %c0_i32 = arith.constant 0 : i32
    %c0_i32_0 = arith.constant 0 : i32
    return %arg0, %c0_i32 : i32, i32
  }
}

</mosaic_0001>

<bundles_post_ra>
// kernel: tpu_custom_call.1
= control target key start
LH: loop header
LB: loop body
LE: loop exit
PB: predicated region body
PF: predicated region fallthrough
CT: control target
= control target key end

     0   :  { %11 = vsyncpa [#allocation3], 0  ;;  %v343_v1 = vmov 0   ;;  %s344_s20 = smov 1   ;;  %s446_s0 = inlined_call_operand.vmem [shape: f32[2,128], index: 0, kind: input, shape index: {}]   ;;  %s447_s1 = inlined_call_operand.vmem [shape: f32[3,8,1], index: 1, kind: input, shape index: {}]   ;;  %s448_s2 = inlined_call_operand.vmem [shape: f32[1,8,1], index: 2, kind: input, shape index: {}]   ;;  %s449_s3 = inlined_call_operand.vmem [shape: f32[3,8,1], index: 3, kind: input, shape index: {}]   ;;  %s450_s4 = inlined_call_operand.hbm [shape: f32[2,8], index: 4, kind: output, shape index: {0}]   ;;  %s451_s5 = inlined_call_operand.hbm [shape: f32[2,8], index: 5, kind: output, shape index: {1}]  }
   0x1   :  { %v21_v0 = vld [vmem:[%s446_s0] sm:$0x3]  ;;  %285 = vset.pattern.permute.xlu1 %v343_v1  ;;  %286 = vset.pattern.permute.xlu0 %v343_v1 }
   0x2   :  { %32 = vrot.lane.b32.xlu0 %v21_v0, %s344_s20  ;;  %v25_v2 = vld [vmem:[%s449_s3] sm:$0xff] }
   0x3   :  { %172 = vperm.xlu1 %285, %v25_v2  }
   0x4   :  { %12 = vsyncpa [#allocation5], 0  ;;  %v26_v3 = vld [vmem:[%s449_s3 + $0x8] sm:$0xff]  ;;  %s345_s25 = smov 127   ;;  %v27_v4 = vld [vmem:[%s449_s3 + $0x10] sm:$0xff]  ;;  %v29_v6 = vlaneseq  ;;  %vm229_vm2 = vcmask 1041409  }
   0x5   :  { %v22_v5 = vld [vmem:[%s447_s1] sm:$0xff]  ;;  %v346_v7 = vmov 1966171168   ;;  %v24_v49 = vld [vmem:[%s447_s1 + $0x10] sm:$0xff]  ;;  %v23_v51 = vld [vmem:[%s447_s1 + $0x8] sm:$0xff]  ;;  %s347_s1 = smov [#allocation4]  }
   0x6   :  { %36 = vrot.lane.b32.xlu0 %v21_v0, %s345_s25  ;;  %v41_v8 = vunpack.c.l.s4 %v346_v7  ;;  %v394_v9 = vand.u32 127, %v29_v6  ;;  %v396_v11 = vshrl.u32 %v29_v6, 7  ;;  %v28_v50 = vld [vmem:[%s448_s2] sm:$0xff]  ;;  %s267_s2 = sshll.u32 %s347_s1, 4  ;;  %vm232_vm3 = vcmask 58368   ;;  %s348_s9 = smov [#allocation2]   ;;  %s268_s2 = int_to_ptr.vmem [resolvable:$true] %s267_s2 }
   0x7   :  { %179 = vperm.xlu1 %285, %v26_v3   ;;  %s257_s10 = sshll.u32 %s348_s9, 4  ;;  %s295_s11 = scalar_lea.vmem %s268_s2, 32  ;;  %s413_s10 = int_to_ptr.vmem [resolvable:$true] %s257_s10 }
   0x8   :  { %v42_v10 = vunpack.c.0.s8 %v41_v8  ;;  %vm31_vm0 = vcmp.eq.s32.totalorder %v394_v9, 0  ;;  %vm35_vm1 = vcmp.eq.s32.totalorder %v394_v9, 127  ;;  %v115_v27 = vsub.s32 0, %v396_v11  ;;  %p296_p0 = scmp.ne.s32.totalorder %s268_s2, %s295_s11  ;;  %p300_p1 = scmp.lt.s32.totalorder %s268_s2, %s268_s2 }
   0x9   :  { %p301_p2 = scmp.lt.s32.totalorder %s295_s11, %s295_s11 }
   0xa   :  { %188 = vperm.xlu0 %286, %v27_v4   ;;  %v45_v13 = vsub.s32 %v42_v10, %v396_v11 }
   0xb   :  { %110 = vperm.xlu1 %285, %v22_v5   ;;  %p302_p3 = por %p301_p2, %p300_p1 }
   0xc   :  { %v69_v15 = vrot.slane %v21_v0, %v45_v13 }
   0xd   :  { %p303_p4 = pnand %p302_p3, %p296_p0 }
   0xe   :  { %v70_v19 = vcombine.high %v69_v15, %v69_v15  ;;  %v77_v22 = vrot.slane %v69_v15, %v45_v13 }
  0x10   :  { %v84_v23 = vrot.slane %v70_v19, %v45_v13  ;;  %v133_v29 = vrot.slane %v77_v22, %v115_v27 }
  0x12   :  { %v137_v30 = vrot.slane %v84_v23, %v115_v27 }
  0x74   :  { %v33_v12 = vpop.permute.xlu0 %32 }
  0x75   :  { %v34_v14 = vsel %vm31_vm0, 0.0, %v33_v12 }
  0x76   :  { %v46_v17 = vrot.slane %v34_v14, %v45_v13 }
  0x78   :  { %v37_v16 = vpop.permute.xlu0 %36  ;;  %v47_v21 = vcombine.high %v46_v17, %v46_v17  ;;  %v54_v25 = vrot.slane %v46_v17, %v45_v13 }
  0x79   :  { %v38_v18 = vsel %vm35_vm1, 0.0, %v37_v16 }
  0x7a   :  { %v92_v20 = vrot.slane %v38_v18, %v45_v13  ;;  %v61_v26 = vrot.slane %v47_v21, %v45_v13  ;;  %v116_v33 = vrot.slane %v54_v25, %v115_v27 }
  0x7c   :  { %v93_v24 = vcombine.high %v92_v20, %v92_v20  ;;  %v100_v31 = vrot.slane %v92_v20, %v45_v13  ;;  %v120_v34 = vrot.slane %v61_v26, %v115_v27  ;;  %v223_v20 = vsub.s32 %v394_v9, %v396_v11 }
  0x7e   :  { %v107_v32 = vrot.slane %v93_v24, %v45_v13  ;;  %v152_v40 = vrot.slane %v100_v31, %v115_v27 }
  0x80   :  { %v156_v41 = vrot.slane %v107_v32, %v115_v27 }
  0x82   :  { %v173_v28 = vpop.permute.xlu1 %172 }
  0x83   :  { %v175_v36 = vmul.f32 %v173_v28, %v116_v33  ;;  %v176_v37 = vmul.f32 %v173_v28, %v120_v34 }
  0x86   :  { %v180_v35 = vpop.permute.xlu1 %179 }
  0x87   :  { %v182_v38 = vmul.f32 %v180_v35, %v133_v29  ;;  %v183_v39 = vmul.f32 %v180_v35, %v137_v30 }
  0x89   :  { %v189_v42 = vpop.permute.xlu0 %188  ;;  %v184_v43 = vadd.f32 %v182_v38, %v175_v36  ;;  %v185_v44 = vadd.f32 %v183_v39, %v176_v37 }
  0x8a   :  { %v191_v45 = vmul.f32 %v189_v42, %v152_v40  ;;  %v192_v46 = vmul.f32 %v189_v42, %v156_v41  ;;  %v111_v52 = vpop.permute.xlu1 %110 }
  0x8b   :  { %v123_v61 = vmul.f32 %v116_v33, %v111_v52  ;;  %v124_v62 = vmul.f32 %v120_v34, %v111_v52 }
  0x8c   :  { %v193_v47 = vadd.f32 %v191_v45, %v184_v43  ;;  %v194_v48 = vadd.f32 %v192_v46, %v185_v44 }
  0x8e   :  { %195 = vmax.xlane.f32.xlu1 %v193_v47  ;;  %197 = vmax.xlane.f32.xlu0 %v194_v48 }
  0x9f   :  { %146 = vperm.xlu1 %285, %v24_v49  }
  0xa3   :  { %165 = vperm.xlu1 %285, %v28_v50  }
  0xa4   :  { %127 = vperm.xlu0 %286, %v23_v51  }
 0x11b   :  { %v196_v53 = vpop.xlane.xlu1 %195  ;;  %v198_v54 = vpop.xlane.xlu0 %197 }
 0x11c   :  { %v199_v55 = vsub.f32 %v193_v47, %v196_v53  ;;  %v200_v56 = vsub.f32 %v194_v48, %v198_v54 }
 0x11e   :  { %v201_v57 = vmul.f32 1.442695, %v199_v55  ;;  %v203_v58 = vmul.f32 1.442695, %v200_v56 }
 0x11f   :  { %v147_v59 = vpop.permute.xlu1 %146 }
 0x120   :  { %287 = vpow2.f32 %v201_v57  ;;  %v159_v1 = vmul.f32 %v152_v40, %v147_v59  ;;  %v160_v4 = vmul.f32 %v156_v41, %v147_v59 }
 0x121   :  { %289 = vpow2.f32 %v203_v58 }
 0x123   :  { %v128_v60 = vpop.permute.xlu0 %127  ;;  %v166_v6 = vpop.permute.xlu1 %165 }
 0x124   :  { %v140_v63 = vmul.f32 %v133_v29, %v128_v60  ;;  %v141_v0 = vmul.f32 %v137_v30, %v128_v60 }
 0x126   :  { %v142_v2 = vadd.f32 %v140_v63, %v123_v61  ;;  %v143_v3 = vadd.f32 %v141_v0, %v124_v62 }
 0x128   :  { %v161_v5 = vadd.f32 %v159_v1, %v142_v2  ;;  %v162_v7 = vadd.f32 %v160_v4, %v143_v3 }
 0x12a   :  { %v288_v8 = vpop.eup %287  ;;  %v168_v10 = vadd.f32 %v166_v6, %v161_v5  ;;  %v169_v14 = vadd.f32 %v166_v6, %v162_v7 }
 0x12b   :  { %v290_v12 = vpop.eup %289  ;;  %205 = vadd.xlane.f32.xlu0 %v288_v8 }
 0x12c   :  { %207 = vadd.xlane.f32.xlu1 %v290_v12  ;;  %v209_v13 = vmul.f32 %v288_v8, %v168_v10  ;;  %v210_v15 = vmul.f32 %v290_v12, %v169_v14 }
 0x12f   :  { %211 = vadd.xlane.f32.xlu0 %v209_v13 }
 0x130   :  { %234 = vmax.xlane.f32.xlu1 %v168_v10 }
 0x133   :  { %213 = vadd.xlane.f32.xlu0 %v210_v15 }
 0x137   :  { %236 = vmax.xlane.f32.xlu0 %v169_v14 }
 0x1b8   :  { %v206_v16 = vpop.xlane.xlu0 %205 }
 0x1b9   :  { %v208_v17 = vpop.xlane.xlu1 %207  ;;  %291 = vrcp.f32 %v206_v16 }
 0x1ba   :  { %293 = vrcp.f32 %v208_v17 }
 0x1bc   :  { %v212_v18 = vpop.xlane.xlu0 %211 }
 0x1bd   :  { %v235_v21 = vpop.xlane.xlu1 %234 }
 0x1be   :  { %v243_v26 = vrot.slane %v235_v21, %v223_v20 }
 0x1c0   :  { %v214_v19 = vpop.xlane.xlu0 %213 }
 0x1c3   :  { %v292_v22 = vpop.eup %291 }
 0x1c4   :  { %v294_v23 = vpop.eup %293  ;;  %v217_v24 = vmul.f32 %v292_v22, %v212_v18  ;;  %v237_v25 = vpop.xlane.xlu0 %236 }
 0x1c5   :  { %v218_v27 = vmul.f32 %v294_v23, %v214_v19  ;;  %v247_v28 = vrot.slane %v237_v25, %v223_v20 }
 0x1c6   :  { %v224_v29 = vrot.slane %v217_v24, %v223_v20 }
 0x1c7   :  { %v228_v30 = vrot.slane %v218_v27, %v223_v20  ;;  %v248_v31 = vsel %vm229_vm2, %v247_v28, %v243_v26 }
 0x1c8   :  { %250 = vst.msk [vmem:[#allocation4] sm:$0x3] %vm232_vm3, %v248_v31 }
 0x1c9   :  { %v230_v9 = vsel %vm229_vm2, %v228_v30, %v224_v29 }
 0x1ca   :  { %306 = shalt.err (!%p303_p4)
}
 0x1cb   :  { %s307_s14 = scalar_lea.hbm %s451_s5, 32 }
 0x1cc   :  { %p308_p5 = scmp.ne.s32.totalorder %s451_s5, %s307_s14  ;;  %p311_p6 = scmp.lt.u32.totalorder %s307_s14, %s451_s5 }
 0x1ce   :  { %p313_p7 = pnand %p311_p6, %p308_p5 }
 0x1d0   :  { %316 = shalt.err (!%p313_p7)
}
 0x1d1   :  { %270 = dma.vmem_to_hbm [thread:$0]  %s268_s2, 32, %s451_s5, [#allocation5]   ;;  %233 = vst.msk [vmem:[#allocation2] sm:$0x3] %vm232_vm3, %v230_v9 }
 0x1d2   :  { %s317_s21 = scalar_lea.vmem %s413_s10, 32  ;;  %p322_p9 = scmp.lt.s32.totalorder %s413_s10, %s413_s10 }
 0x1d3   :  { %p318_p8 = scmp.ne.s32.totalorder %s413_s10, %s317_s21  ;;  %p323_p10 = scmp.lt.s32.totalorder %s317_s21, %s317_s21 }
 0x1d5   :  { %p324_p11 = por %p323_p10, %p322_p9 }
 0x1d7   :  { %p325_p12 = pnand %p324_p11, %p318_p8 }
 0x1d9   :  { %328 = shalt.err (!%p325_p12)
}
 0x1da   :  { %s329_s24 = scalar_lea.hbm %s450_s4, 32 }
 0x1db   :  { %p330_p13 = scmp.ne.s32.totalorder %s450_s4, %s329_s24  ;;  %p333_p0 = scmp.lt.u32.totalorder %s329_s24, %s450_s4 }
 0x1dd   :  { %p335_p1 = pnand %p333_p0, %p330_p13 }
 0x1df   :  { %338 = shalt.err (!%p335_p1)
}
 0x1e0   :  { %260 = dma.vmem_to_hbm [thread:$0]  %s413_s10, 32, %s450_s4, [#allocation3]  }
 0x1e1   :  { %339 = dma.done.wait [#allocation3], 32  }
 0x1e2   :  { %340 = vsyncadd [#allocation3], 4294967264 }
 0x1e3   :  { %341 = dma.done.wait [#allocation5], 32  }
 0x1e4   :  { %342 = vsyncadd [#allocation5], 4294967264 }
 0x1e5   :  { %277 = vsyncpa [#allocation3], 1 }
 0x1e6   :  { %278 = vsyncpa [#allocation5], 1 }

</bundles_post_ra>
